<compile_context>
chip_gen: v7x
topology: tpu7x:2x2x1
jax: 0.10.0
libtpu: 0.0.40
codegen_flags: <defaults>
</compile_context>

<pallas_src>
import math
from functools import partial

import jax
import jax.numpy as jnp
from jax.experimental import pallas as pl
from jax.experimental.pallas import tpu as pltpu

NUM = 64       # hidden channel count of A_net
_LANE = 128
_SUBLANE = 8


# ---------------------------------------------------------------------------
# Pallas kernels
# ---------------------------------------------------------------------------
def _fused_kernel(x_ref, w1_ref, b1_ref, w2_ref, b2_ref, w3_ref, b3_ref,
                  w4_ref, b4_ref, w5_ref, b5_ref, el_ref, a_ref):
    """Single-pass kernel: per-batch max + collapsed A_net MLP + pow.

    x_ref : (1, R, 128)  whole per-batch spatial slab (VMEM resident)
    w1    : (1, NUM)     tap-summed first conv,  b1: (1, NUM)
    w2..4 : (NUM, NUM)   tap-summed hidden convs, b2..4: (1, NUM)
    w5    : (1, NUM)     tap-summed last conv (transposed), b5: (1, 1)
    el_ref: (1, R, 128)  EL = x ** a
    a_ref : (1, R, 128)  broadcast a-map
    """
    x = x_ref[0].astype(jnp.float32)                         # (R, 128)
    m_lane = jnp.max(x, axis=0, keepdims=True)               # (1, 128) sublane reduce
    m = jnp.max(m_lane, axis=1, keepdims=True)               # (1, 1)   lane reduce

    # Collapsed A_net chain (exact): tiny per-batch MLP.
    h = jnp.maximum(m * w1_ref[...] + b1_ref[...], 0.0)      # (1, NUM)
    h = jnp.maximum(
        jnp.dot(h, w2_ref[...], preferred_element_type=jnp.float32)
        + b2_ref[...], 0.0)
    h = jnp.maximum(
        jnp.dot(h, w3_ref[...], preferred_element_type=jnp.float32)
        + b3_ref[...], 0.0)
    h = jnp.maximum(
        jnp.dot(h, w4_ref[...], preferred_element_type=jnp.float32)
        + b4_ref[...], 0.0)
    logit = jnp.sum(h * w5_ref[...], axis=-1, keepdims=True) + b5_ref[...]
    a = jax.nn.sigmoid(logit)                                 # (1, 1)

    ab = jnp.broadcast_to(a.reshape(1, 1, 1), el_ref.shape)
    el_ref[...] = jnp.power(x_ref[...].astype(jnp.float32), ab).astype(el_ref.dtype)
    a_ref[...] = ab.astype(a_ref.dtype)


def _max_kernel(x_ref, mx_ref, m_sc):
    """Tiled per-batch lane-wise max (two-pass path).

    grid = (B, rows // TR); x_ref: (1, TR, 128); mx_ref: (1, 1, 128);
    m_sc: (8, 128) VMEM running max (per-batch, reset at the first row tile).
    """
    r = pl.program_id(1)

    @pl.when(r == 0)
    def _():
        m_sc[...] = jnp.full(m_sc.shape, -jnp.inf, dtype=jnp.float32)

    t = x_ref[0].astype(jnp.float32)                          # (TR, 128)
    tr = t.shape[0]                                           # static, multiple of 8
    # Pure elementwise vmax across the TR//8 stacked (8,128) vregs (VPU only).
    t8 = jnp.max(t.reshape(tr // _SUBLANE, _SUBLANE, _LANE), axis=0)
    m_sc[...] = jnp.maximum(m_sc[...], t8)

    @pl.when(r == pl.num_programs(1) - 1)
    def _():
        # Single sublane reduce per batch; cross-lane reduce happens in JAX.
        mx_ref[...] = jnp.max(m_sc[...], axis=0, keepdims=True)[None]


def _pow_kernel(x_ref, a_ref, el_ref, afull_ref):
    """EL = x ** a (per-batch scalar a) plus the broadcast a-map (two-pass path).

    x_ref: (1, TR, 128); a_ref: (1, 1, 1); outputs: (1, TR, 128) lane-dense.
    """
    ab = jnp.broadcast_to(a_ref[...].astype(jnp.float32), el_ref.shape)
    el_ref[...] = jnp.power(x_ref[...].astype(jnp.float32), ab).astype(el_ref.dtype)
    afull_ref[...] = ab.astype(afull_ref.dtype)


# ---------------------------------------------------------------------------
# Helpers
# ---------------------------------------------------------------------------
def _plan_tiles(n, force_two_pass):
    """Choose (rows_padded, tile_rows, fused) for flattened spatial size n.

    Byte-based: kernel-2 keeps 3 big streams x double buffer resident, so we
    bound 6 * tile_rows * 128 * 4 <= ~24 MiB (fits the scoped VMEM default on
    v5e/v6e/v7x with headroom; per-DMA stays multi-MiB)."""
    rows_raw = -(-n // _LANE)
    budget_bytes = 24 * 1024 * 1024
    n_resident = 3 * 2                       # 3 streams, double-buffered
    max_tile_rows = budget_bytes // (n_resident * _LANE * 4)
    max_tile_rows = max(_SUBLANE, (max_tile_rows // _SUBLANE) * _SUBLANE)

    if rows_raw <= max_tile_rows and not force_two_pass:
        # Whole per-batch slab fits in VMEM -> fused single-pass kernel.
        return rows_raw, rows_raw, True

    # Two-pass path: tile rows must be a multiple of 8 and divide padded rows.
    tile_rows = min(max_tile_rows, -(-rows_raw // _SUBLANE) * _SUBLANE)
    rows = -(-rows_raw // tile_rows) * tile_rows
    return rows, tile_rows, False


def _fold_a_net_params(params):
    """Sum each 3x3 conv kernel over its taps -> (Cin, Cout) matrices.

    Exact for the spatially-constant images that A_net sees in this module."""
    folded = []
    for w, b in params:                       # w: (Cout, Cin, 3, 3), b: (Cout,)
        ws = jnp.sum(w, axis=(2, 3)).T        # (Cin, Cout)
        folded.append((ws, b.reshape(1, -1)))
    return folded


def init_params(key, num=NUM):
    """Five conv layers (PyTorch-shaped): 1->num, num->num x3, num->1."""
    channels = [(1, num), (num, num), (num, num), (num, num), (num, 1)]
    params = []
    for cin, cout in channels:
        key, kw, kb = jax.random.split(key, 3)
        bound = 1.0 / math.sqrt(9.0 * cin)
        w = jax.random.uniform(kw, (cout, cin, 3, 3), jnp.float32, -bound, bound)
        b = jax.random.uniform(kb, (cout,), jnp.float32, -bound, bound)
        params.append((w, b))
    return params


# ---------------------------------------------------------------------------
# Forward
# ---------------------------------------------------------------------------
@partial(jax.jit, static_argnames=("force_two_pass",))
def a_net_forward(x_nchw, params, force_two_pass=False):
    B, C, H, W = x_nchw.shape
    assert C == 1, "A_net's first conv expects a single input channel"
    N = H * W

    rows, tile_rows, fused = _plan_tiles(N, force_two_pass)

    # Lane-dense, sublane-packed layout: (B, rows, 128).  Pad with -inf so the
    # per-batch max is unaffected; the pad region is sliced off afterwards.
    x2 = x_nchw.reshape(B, N)
    pad = rows * _LANE - N
    if pad:
        x2 = jnp.pad(x2, ((0, 0), (0, pad)), constant_values=-jnp.inf)
    x3 = x2.reshape(B, rows, _LANE)

    (w1, b1), (w2, b2), (w3, b3), (w4, b4), (w5, b5) = _fold_a_net_params(params)
    w5_row = w5.T                             # (1, NUM)
    b5 = b5.reshape(1, 1)

    def _const_spec(arr):
        return pl.BlockSpec(arr.shape, lambda b: (0, 0))

    if fused:
        # --- single pallas_call: max + collapsed MLP + pow, x read once ------
        el3, a3 = pl.pallas_call(
            _fused_kernel,
            out_shape=(jax.ShapeDtypeStruct((B, rows, _LANE), x_nchw.dtype),
                       jax.ShapeDtypeStruct((B, rows, _LANE), jnp.float32)),
            grid_spec=pltpu.PrefetchScalarGridSpec(
                num_scalar_prefetch=0,
                grid=(B,),
                in_specs=[
                    pl.BlockSpec((1, rows, _LANE), lambda b: (b, 0, 0)),
                    _const_spec(w1), _const_spec(b1),
                    _const_spec(w2), _const_spec(b2),
                    _const_spec(w3), _const_spec(b3),
                    _const_spec(w4), _const_spec(b4),
                    _const_spec(w5_row), _const_spec(b5),
                ],
                out_specs=[
                    pl.BlockSpec((1, rows, _LANE), lambda b: (b, 0, 0)),
                    pl.BlockSpec((1, rows, _LANE), lambda b: (b, 0, 0)),
                ],
            ),
            compiler_params=pltpu.CompilerParams(
                dimension_semantics=("parallel",)),
        )(x3, w1, b1, w2, b2, w3, b3, w4, b4, w5_row, b5)
    else:
        n_r_tiles = rows // tile_rows

        # --- kernel 1: tiled per-batch lane-wise max -> (B, 1, 128) ----------
        mx = pl.pallas_call(
            _max_kernel,
            out_shape=jax.ShapeDtypeStruct((B, 1, _LANE), jnp.float32),
            grid_spec=pltpu.PrefetchScalarGridSpec(
                num_scalar_prefetch=0,
                grid=(B, n_r_tiles),
                in_specs=[pl.BlockSpec((1, tile_rows, _LANE),
                                       lambda b, r: (b, r, 0))],
                out_specs=pl.BlockSpec((1, 1, _LANE), lambda b, r: (b, 0, 0)),
                scratch_shapes=[pltpu.VMEM((_SUBLANE, _LANE), jnp.float32)],
            ),
            compiler_params=pltpu.CompilerParams(
                dimension_semantics=("parallel", "arbitrary")),
        )(x3)

        # Collapsed A_net chain in plain JAX: O(B*NUM^2) FLOPs, exact.
        m = jnp.max(mx[:, 0, :], axis=-1, keepdims=True)      # (B, 1)
        h = jax.nn.relu(m @ w1 + b1)
        h = jax.nn.relu(h @ w2 + b2)
        h = jax.nn.relu(h @ w3 + b3)
        h = jax.nn.relu(h @ w4 + b4)
        a_b = jax.nn.sigmoid(h @ w5 + b5)                     # (B, 1)
        a_in = a_b.reshape(B, 1, 1)

        # --- kernel 2: EL = x ** a and the broadcast a-map -------------------
        el3, a3 = pl.pallas_call(
            _pow_kernel,
            out_shape=(jax.ShapeDtypeStruct((B, rows, _LANE), x_nchw.dtype),
                       jax.ShapeDtypeStruct((B, rows, _LANE), jnp.float32)),
            grid_spec=pltpu.PrefetchScalarGridSpec(
                num_scalar_prefetch=0,
                grid=(B, n_r_tiles),
                in_specs=[
                    pl.BlockSpec((1, tile_rows, _LANE), lambda b, r: (b, r, 0)),
                    pl.BlockSpec((1, 1, 1), lambda b, r: (b, 0, 0)),
                ],
                out_specs=[
                    pl.BlockSpec((1, tile_rows, _LANE), lambda b, r: (b, r, 0)),
                    pl.BlockSpec((1, tile_rows, _LANE), lambda b, r: (b, r, 0)),
                ],
            ),
            compiler_params=pltpu.CompilerParams(
                dimension_semantics=("parallel", "parallel")),
        )(x3, a_in)

    el = el3.reshape(B, rows * _LANE)[:, :N].reshape(B, 1, H, W)
    a_full = a3.reshape(B, rows * _LANE)[:, :N].reshape(B, 1, H, W)
    return el, a_full


# Pure-JAX reference of the same (exact) collapsed formulation, for checking.
def _ref_forward(x, params):
    B = x.shape[0]
    (w1, b1), (w2, b2), (w3, b3), (w4, b4), (w5, b5) = _fold_a_net_params(params)
    m = jnp.max(x.reshape(B, -1), axis=1, keepdims=True)
    h = jax.nn.relu(m @ w1 + b1)
    h = jax.nn.relu(h @ w2 + b2)
    h = jax.nn.relu(h @ w3 + b3)
    h = jax.nn.relu(h @ w4 + b4)
    a = jax.nn.sigmoid(h @ w5 + b5)                        # (B, 1)
    a_full = jnp.broadcast_to(a[:, :, None, None], x.shape)
    return jnp.power(x, a_full), a_full


# ---------------------------------------------------------------------------
if __name__ == "__main__":
    key = jax.random.PRNGKey(0)
    kx, kx2, kp = jax.random.split(key, 3)
    params = init_params(kp, NUM)

    # --- fused single-pass path (B, 1, 16, 16) ------------------------------
    x = jax.random.uniform(kx, (2, 1, 16, 16), jnp.float32,
                           minval=0.01, maxval=1.0)
    el, a = a_net_forward(x, params)
    jax.block_until_ready(el)
    jax.block_until_ready(a)

    assert el.shape == x.shape and a.shape == x.shape
    assert bool(jnp.all(jnp.isfinite(el))) and bool(jnp.all(jnp.isfinite(a)))
    assert bool(jnp.all((a > 0.0) & (a < 1.0)))
    el_ref, a_ref = _ref_forward(x, params)
    assert bool(jnp.allclose(a, a_ref, rtol=2e-3, atol=2e-3))
    assert bool(jnp.allclose(el, el_ref, rtol=2e-3, atol=2e-3))

    # --- two-pass tiled path, non-128-multiple spatial size (padding) -------
    xb = jax.random.uniform(kx2, (2, 1, 15, 17), jnp.float32,
                            minval=0.01, maxval=1.0)
    el_b, a_b = a_net_forward(xb, params, force_two_pass=True)
    jax.block_until_ready(el_b)
    jax.block_until_ready(a_b)

    assert el_b.shape == xb.shape and a_b.shape == xb.shape
    assert bool(jnp.all(jnp.isfinite(el_b))) and bool(jnp.all(jnp.isfinite(a_b)))
    el_br, a_br = _ref_forward(xb, params)
    assert bool(jnp.allclose(a_b, a_br, rtol=2e-3, atol=2e-3))
    assert bool(jnp.allclose(el_b, el_br, rtol=2e-3, atol=2e-3))

    print("KERNEL_OK")
</pallas_src>

<mosaic_0001>
module attributes {stable_mosaic.version = 11 : i64} {
  func.func @_fused_kernel(%arg0: i32, %arg1: memref<1x2x128xf32, #tpu.memory_space<vmem>>, %arg2: memref<1x64xf32, #tpu.memory_space<vmem>>, %arg3: memref<1x64xf32, #tpu.memory_space<vmem>>, %arg4: memref<64x64xf32, #tpu.memory_space<vmem>>, %arg5: memref<1x64xf32, #tpu.memory_space<vmem>>, %arg6: memref<64x64xf32, #tpu.memory_space<vmem>>, %arg7: memref<1x64xf32, #tpu.memory_space<vmem>>, %arg8: memref<64x64xf32, #tpu.memory_space<vmem>>, %arg9: memref<1x64xf32, #tpu.memory_space<vmem>>, %arg10: memref<1x64xf32, #tpu.memory_space<vmem>>, %arg11: memref<1x1xf32, #tpu.memory_space<vmem>>, %arg12: memref<1x2x128xf32, #tpu.memory_space<vmem>>, %arg13: memref<1x2x128xf32, #tpu.memory_space<vmem>>) attributes {dimension_semantics = [#tpu.dimension_semantics<parallel>], iteration_bounds = array<i64: 2>, scalar_prefetch = 0 : i64, scratch_operands = 0 : i64, tpu.core_type = #tpu.core_type<tc>, window_params = [{transform_indices = @transform_0, window_bounds = array<i64: 1, 2, 128>}, {pipeline_mode = #tpu.pipeline_mode<synchronous>, transform_indices = @transform_1, window_bounds = array<i64: 1, 64>}, {pipeline_mode = #tpu.pipeline_mode<synchronous>, transform_indices = @transform_2, window_bounds = array<i64: 1, 64>}, {pipeline_mode = #tpu.pipeline_mode<synchronous>, transform_indices = @transform_3, window_bounds = array<i64: 64, 64>}, {pipeline_mode = #tpu.pipeline_mode<synchronous>, transform_indices = @transform_4, window_bounds = array<i64: 1, 64>}, {pipeline_mode = #tpu.pipeline_mode<synchronous>, transform_indices = @transform_5, window_bounds = array<i64: 64, 64>}, {pipeline_mode = #tpu.pipeline_mode<synchronous>, transform_indices = @transform_6, window_bounds = array<i64: 1, 64>}, {pipeline_mode = #tpu.pipeline_mode<synchronous>, transform_indices = @transform_7, window_bounds = array<i64: 64, 64>}, {pipeline_mode = #tpu.pipeline_mode<synchronous>, transform_indices = @transform_8, window_bounds = array<i64: 1, 64>}, {pipeline_mode = #tpu.pipeline_mode<synchronous>, transform_indices = @transform_9, window_bounds = array<i64: 1, 64>}, {pipeline_mode = #tpu.pipeline_mode<synchronous>, transform_indices = @transform_10, window_bounds = array<i64: 1, 1>}, {transform_indices = @transform_11, window_bounds = array<i64: 1, 2, 128>}, {transform_indices = @transform_12, window_bounds = array<i64: 1, 2, 128>}]} {
    %c0 = arith.constant 0 : index
    %c0_0 = arith.constant 0 : index
    %c0_1 = arith.constant 0 : index
    %0 = vector.load %arg1[%c0, %c0_0, %c0_1] : memref<1x2x128xf32, #tpu.memory_space<vmem>>, vector<1x2x128xf32>
    %1 = vector.shape_cast %0 : vector<1x2x128xf32> to vector<2x128xf32>
    %cst = arith.constant dense<0xFF800000> : vector<128xf32>
    %2 = vector.multi_reduction <maximumf>, %1, %cst [0] : vector<2x128xf32> to vector<128xf32>
    %3 = vector.shape_cast %2 : vector<128xf32> to vector<1x128xf32>
    %cst_2 = arith.constant dense<0xFF800000> : vector<1xf32>
    %4 = vector.multi_reduction <maximumf>, %3, %cst_2 [1] : vector<1x128xf32> to vector<1xf32>
    %5 = vector.shape_cast %4 : vector<1xf32> to vector<1x1xf32>
    %c0_3 = arith.constant 0 : index
    %c0_4 = arith.constant 0 : index
    %6 = vector.load %arg2[%c0_3, %c0_4] : memref<1x64xf32, #tpu.memory_space<vmem>>, vector<1x64xf32>
    %7 = vector.broadcast %5 : vector<1x1xf32> to vector<1x64xf32>
    %8 = arith.mulf %7, %6 : vector<1x64xf32>
    %c0_5 = arith.constant 0 : index
    %c0_6 = arith.constant 0 : index
    %9 = vector.load %arg3[%c0_5, %c0_6] : memref<1x64xf32, #tpu.memory_space<vmem>>, vector<1x64xf32>
    %10 = arith.addf %8, %9 : vector<1x64xf32>
    %cst_7 = arith.constant 0.000000e+00 : f32
    %11 = vector.broadcast %cst_7 : f32 to vector<1x64xf32>
    %12 = arith.maximumf %10, %11 : vector<1x64xf32>
    %c0_8 = arith.constant 0 : index
    %c0_9 = arith.constant 0 : index
    %13 = vector.load %arg4[%c0_8, %c0_9] : memref<64x64xf32, #tpu.memory_space<vmem>>, vector<64x64xf32>
    %cst_10 = arith.constant dense<0.000000e+00> : vector<1x64xf32>
    %14 = tpu.matmul %12, %13, %cst_10 {dimension_numbers = #tpu.dot_dimension_numbers<[1], [0], [0], [1], [0, 0, 1, 1], [], []>} : vector<1x64xf32>, vector<64x64xf32>, vector<1x64xf32> -> vector<1x64xf32>
    %c0_11 = arith.constant 0 : index
    %c0_12 = arith.constant 0 : index
    %15 = vector.load %arg5[%c0_11, %c0_12] : memref<1x64xf32, #tpu.memory_space<vmem>>, vector<1x64xf32>
    %16 = arith.addf %14, %15 : vector<1x64xf32>
    %cst_13 = arith.constant 0.000000e+00 : f32
    %17 = vector.broadcast %cst_13 : f32 to vector<1x64xf32>
    %18 = arith.maximumf %16, %17 : vector<1x64xf32>
    %c0_14 = arith.constant 0 : index
    %c0_15 = arith.constant 0 : index
    %19 = vector.load %arg6[%c0_14, %c0_15] : memref<64x64xf32, #tpu.memory_space<vmem>>, vector<64x64xf32>
    %cst_16 = arith.constant dense<0.000000e+00> : vector<1x64xf32>
    %20 = tpu.matmul %18, %19, %cst_16 {dimension_numbers = #tpu.dot_dimension_numbers<[1], [0], [0], [1], [0, 0, 1, 1], [], []>} : vector<1x64xf32>, vector<64x64xf32>, vector<1x64xf32> -> vector<1x64xf32>
    %c0_17 = arith.constant 0 : index
    %c0_18 = arith.constant 0 : index
    %21 = vector.load %arg7[%c0_17, %c0_18] : memref<1x64xf32, #tpu.memory_space<vmem>>, vector<1x64xf32>
    %22 = arith.addf %20, %21 : vector<1x64xf32>
    %cst_19 = arith.constant 0.000000e+00 : f32
    %23 = vector.broadcast %cst_19 : f32 to vector<1x64xf32>
    %24 = arith.maximumf %22, %23 : vector<1x64xf32>
    %c0_20 = arith.constant 0 : index
    %c0_21 = arith.constant 0 : index
    %25 = vector.load %arg8[%c0_20, %c0_21] : memref<64x64xf32, #tpu.memory_space<vmem>>, vector<64x64xf32>
    %cst_22 = arith.constant dense<0.000000e+00> : vector<1x64xf32>
    %26 = tpu.matmul %24, %25, %cst_22 {dimension_numbers = #tpu.dot_dimension_numbers<[1], [0], [0], [1], [0, 0, 1, 1], [], []>} : vector<1x64xf32>, vector<64x64xf32>, vector<1x64xf32> -> vector<1x64xf32>
    %c0_23 = arith.constant 0 : index
    %c0_24 = arith.constant 0 : index
    %27 = vector.load %arg9[%c0_23, %c0_24] : memref<1x64xf32, #tpu.memory_space<vmem>>, vector<1x64xf32>
    %28 = arith.addf %26, %27 : vector<1x64xf32>
    %cst_25 = arith.constant 0.000000e+00 : f32
    %29 = vector.broadcast %cst_25 : f32 to vector<1x64xf32>
    %30 = arith.maximumf %28, %29 : vector<1x64xf32>
    %c0_26 = arith.constant 0 : index
    %c0_27 = arith.constant 0 : index
    %31 = vector.load %arg10[%c0_26, %c0_27] : memref<1x64xf32, #tpu.memory_space<vmem>>, vector<1x64xf32>
    %32 = arith.mulf %30, %31 : vector<1x64xf32>
    %cst_28 = arith.constant dense<0.000000e+00> : vector<1xf32>
    %33 = vector.multi_reduction <add>, %32, %cst_28 [1] : vector<1x64xf32> to vector<1xf32>
    %34 = vector.shape_cast %33 : vector<1xf32> to vector<1x1xf32>
    %c0_29 = arith.constant 0 : index
    %c0_30 = arith.constant 0 : index
    %35 = vector.load %arg11[%c0_29, %c0_30] : memref<1x1xf32, #tpu.memory_space<vmem>>, vector<1x1xf32>
    %36 = arith.addf %34, %35 : vector<1x1xf32>
    %37 = arith.negf %36 : vector<1x1xf32>
    %38 = math.exp %37 : vector<1x1xf32>
    %cst_31 = arith.constant 1.000000e+00 : f32
    %39 = vector.broadcast %cst_31 : f32 to vector<1x1xf32>
    %40 = arith.addf %39, %38 : vector<1x1xf32>
    %41 = arith.divf %39, %40 : vector<1x1xf32>
    %42 = vector.shape_cast %41 : vector<1x1xf32> to vector<1x1x1xf32>
    %43 = vector.shape_cast %42 : vector<1x1x1xf32> to vector<1x1x1xf32>
    %44 = vector.broadcast %43 : vector<1x1x1xf32> to vector<1x2x128xf32>
    %c0_32 = arith.constant 0 : index
    %c0_33 = arith.constant 0 : index
    %c0_34 = arith.constant 0 : index
    %45 = vector.load %arg1[%c0_32, %c0_33, %c0_34] : memref<1x2x128xf32, #tpu.memory_space<vmem>>, vector<1x2x128xf32>
    %46 = math.powf %45, %44 : vector<1x2x128xf32>
    %c0_35 = arith.constant 0 : index
    %c0_36 = arith.constant 0 : index
    %c0_37 = arith.constant 0 : index
    %47 = vector.load %arg12[%c0_35, %c0_36, %c0_37] : memref<1x2x128xf32, #tpu.memory_space<vmem>>, vector<1x2x128xf32>
    tpu.vector_store %arg12[%c0_35, %c0_36, %c0_37], %46 {strides = array<i32>} : memref<1x2x128xf32, #tpu.memory_space<vmem>>, vector<1x2x128xf32>,
    %c0_38 = arith.constant 0 : index
    %c0_39 = arith.constant 0 : index
    %c0_40 = arith.constant 0 : index
    %48 = vector.load %arg13[%c0_38, %c0_39, %c0_40] : memref<1x2x128xf32, #tpu.memory_space<vmem>>, vector<1x2x128xf32>
    tpu.vector_store %arg13[%c0_38, %c0_39, %c0_40], %44 {strides = array<i32>} : memref<1x2x128xf32, #tpu.memory_space<vmem>>, vector<1x2x128xf32>,
    return
  }
  func.func @transform_0(%arg0: i32) -> (i32, i32, i32) {
    %c0_i32 = arith.constant 0 : i32
    %c0_i32_0 = arith.constant 0 : i32
    %c0_i32_1 = arith.constant 0 : i32
    return %arg0, %c0_i32, %c0_i32_0 : i32, i32, i32
  }
  func.func @transform_1(%arg0: i32) -> (i32, i32) {
    %c0_i32 = arith.constant 0 : i32
    %c0_i32_0 = arith.constant 0 : i32
    %c0_i32_1 = arith.constant 0 : i32
    return %c0_i32, %c0_i32_0 : i32, i32
  }
  func.func @transform_2(%arg0: i32) -> (i32, i32) {
    %c0_i32 = arith.constant 0 : i32
    %c0_i32_0 = arith.constant 0 : i32
    %c0_i32_1 = arith.constant 0 : i32
    return %c0_i32, %c0_i32_0 : i32, i32
  }
  func.func @transform_3(%arg0: i32) -> (i32, i32) {
    %c0_i32 = arith.constant 0 : i32
    %c0_i32_0 = arith.constant 0 : i32
    %c0_i32_1 = arith.constant 0 : i32
    return %c0_i32, %c0_i32_0 : i32, i32
  }
  func.func @transform_4(%arg0: i32) -> (i32, i32) {
    %c0_i32 = arith.constant 0 : i32
    %c0_i32_0 = arith.constant 0 : i32
    %c0_i32_1 = arith.constant 0 : i32
    return %c0_i32, %c0_i32_0 : i32, i32
  }
  func.func @transform_5(%arg0: i32) -> (i32, i32) {
    %c0_i32 = arith.constant 0 : i32
    %c0_i32_0 = arith.constant 0 : i32
    %c0_i32_1 = arith.constant 0 : i32
    return %c0_i32, %c0_i32_0 : i32, i32
  }
  func.func @transform_6(%arg0: i32) -> (i32, i32) {
    %c0_i32 = arith.constant 0 : i32
    %c0_i32_0 = arith.constant 0 : i32
    %c0_i32_1 = arith.constant 0 : i32
    return %c0_i32, %c0_i32_0 : i32, i32
  }
  func.func @transform_7(%arg0: i32) -> (i32, i32) {
    %c0_i32 = arith.constant 0 : i32
    %c0_i32_0 = arith.constant 0 : i32
    %c0_i32_1 = arith.constant 0 : i32
    return %c0_i32, %c0_i32_0 : i32, i32
  }
  func.func @transform_8(%arg0: i32) -> (i32, i32) {
    %c0_i32 = arith.constant 0 : i32
    %c0_i32_0 = arith.constant 0 : i32
    %c0_i32_1 = arith.constant 0 : i32
    return %c0_i32, %c0_i32_0 : i32, i32
  }
  func.func @transform_9(%arg0: i32) -> (i32, i32) {
    %c0_i32 = arith.constant 0 : i32
    %c0_i32_0 = arith.constant 0 : i32
    %c0_i32_1 = arith.constant 0 : i32
    return %c0_i32, %c0_i32_0 : i32, i32
  }
  func.func @transform_10(%arg0: i32) -> (i32, i32) {
    %c0_i32 = arith.constant 0 : i32
    %c0_i32_0 = arith.constant 0 : i32
    %c0_i32_1 = arith.constant 0 : i32
    return %c0_i32, %c0_i32_0 : i32, i32
  }
  func.func @transform_11(%arg0: i32) -> (i32, i32, i32) {
    %c0_i32 = arith.constant 0 : i32
    %c0_i32_0 = arith.constant 0 : i32
    %c0_i32_1 = arith.constant 0 : i32
    return %arg0, %c0_i32, %c0_i32_0 : i32, i32, i32
  }
  func.func @transform_12(%arg0: i32) -> (i32, i32, i32) {
    %c0_i32 = arith.constant 0 : i32
    %c0_i32_0 = arith.constant 0 : i32
    %c0_i32_1 = arith.constant 0 : i32
    return %arg0, %c0_i32, %c0_i32_0 : i32, i32, i32
  }
}

</mosaic_0001>

<bundles_post_ra>
// kernel: a_net_forward.1
= control target key start
LH: loop header
LB: loop body
LE: loop exit
PB: predicated region body
PF: predicated region fallthrough
CT: control target
= control target key end

     0   :  { %s1083_s23 = smov 0   ;;  %s1254_s0 = inlined_call_operand.vmem [shape: f32[2,2,128], index: 0, kind: input, shape index: {}]   ;;  %s1255_s1 = inlined_call_operand.vmem [shape: f32[1,64], index: 1, kind: input, shape index: {}]   ;;  %s1256_s2 = inlined_call_operand.vmem [shape: f32[1,64], index: 2, kind: input, shape index: {}]   ;;  %s1257_s3 = inlined_call_operand.vmem [shape: f32[64,64], index: 3, kind: input, shape index: {}]   ;;  %s1258_s4 = inlined_call_operand.vmem [shape: f32[1,64], index: 4, kind: input, shape index: {}]   ;;  %s1259_s5 = inlined_call_operand.vmem [shape: f32[64,64], index: 5, kind: input, shape index: {}]   ;;  %s1260_s6 = inlined_call_operand.vmem [shape: f32[1,64], index: 6, kind: input, shape index: {}]   ;;  %s1261_s7 = inlined_call_operand.vmem [shape: f32[64,64], index: 7, kind: input, shape index: {}]   ;;  %s1262_s8 = inlined_call_operand.vmem [shape: f32[1,64], index: 8, kind: input, shape index: {}]   ;;  %s1263_s9 = inlined_call_operand.vmem [shape: f32[1,64], index: 9, kind: input, shape index: {}]   ;;  %s1264_s10 = inlined_call_operand.<no memory space> [shape: f32[1,1], index: 10, kind: input, shape index: {}]   ;;  %s1265_s11 = inlined_call_operand.vmem [shape: f32[2,2,128], index: 11, kind: output, shape index: {0}]   ;;  %s1266_s12 = inlined_call_operand.vmem [shape: f32[2,2,128], index: 12, kind: output, shape index: {1}]  }
   0x1   :  { %v18_v0 = vstv %s1264_s10 }
   0x2   :  { %19 = vst [vmem:[#allocation2] sm:$0x1] %v18_v0 }
   0x3 LB: > { %s793_s24 = sadd.s32 4294967295, %s1008_s23   ;;  %p797_p0 = scmp.ge.s32.totalorder %s1008_s23, 1  ;;  %s1008_s23 = sphi %s1083_s23, %s25_s23  }
   0x4   : > { %p366_p1 = scmp.lt.s32.totalorder %s1008_s23, 3 }
   0x6   : > { %p367_p2 = pnand %p797_p0, %p366_p1 }
   0x7   : > { %p410_p3 = scmp.lt.s32.totalorder (!%p367_p2), %s793_s24, 1  ;;  %v438_v1 = vld [vmem:[%s1257_s3] sm:$0xff] (!%p367_p2)  ;;  %v439_v2 = vld [vmem:[%s1257_s3 + $0x8] sm:$0xff] (!%p367_p2)  ;;  %v440_v3 = vld [vmem:[%s1257_s3 + $0x10] sm:$0xff] (!%p367_p2)  ;;  %v1010_v4 = vmov (!%p367_p2), 0.0|0.0   ;;  %vm423_vm0 = vcmask (!%p367_p2), 1041408  }
   0x8   : > { %370 = sbr.rel (%p367_p2) target bundleno = 1076 (0x434), region = 64  ;;  %891 = vmatprep.subr.bf16.mxu0 (!%p367_p2), %v1010_v4  ;;  %v892_v5 = vpack.c.bf16 (!%p367_p2), %v439_v2, %v438_v1  ;;  %v441_v6 = vld [vmem:[%s1257_s3 + $0x18] sm:$0xff] (!%p367_p2)  ;;  %903 = vmatprep.subr.bf16.mxu1 (!%p367_p2), %v1010_v4  ;;  %v442_v8 = vld [vmem:[%s1257_s3 + $0x20] sm:$0xff] (!%p367_p2)  ;;  %v443_v9 = vld [vmem:[%s1257_s3 + $0x28] sm:$0xff] (!%p367_p2)  ;;  %vm1011_vm1 = vmmov (!%p367_p2), 0   ;;  %v1012_v22 = vmov (!%p367_p2), 0.0  }
   0x9   : > { %v895_v7 = vpack.c.bf16 (!%p367_p2), %v441_v6, %v440_v3  ;;  %v898_v12 = vpack.c.bf16 (!%p367_p2), %v443_v9, %v442_v8  ;;  %v444_v19 = vld [vmem:[%s1257_s3 + $0x30] sm:$0xff] (!%p367_p2)  ;;  %v445_v20 = vld [vmem:[%s1257_s3 + $0x38] sm:$0xff] (!%p367_p2)  ;;  %850 = vmatprep.mubr.msk.f32.mxu0 (!%p367_p2), %vm1011_vm1, %v1012_v22  ;;  %869 = vmatprep.mubr.msk.f32.mxu1 (!%p367_p2), %vm1011_vm1, %v1012_v22  ;;  %v522_v23 = vld [vmem:[%s1259_s5] sm:$0xff] (!%p367_p2)  ;;  %vm447_vm2 = vcmask (!%p367_p2), 523264   ;;  %vm690_vm3 = vcmask (!%p367_p2), 516096  }
   0xa   : > { %893 = vmatpush3.bf16.msra.mxu0 (!%p367_p2), %v892_v5  ;;  %v901_v21 = vpack.c.bf16 (!%p367_p2), %v445_v20, %v444_v19  ;;  %v523_v24 = vld [vmem:[%s1259_s5 + $0x8] sm:$0xff] (!%p367_p2)  ;;  %v524_v25 = vld [vmem:[%s1259_s5 + $0x10] sm:$0xff] (!%p367_p2)  ;;  %v525_v27 = vld [vmem:[%s1259_s5 + $0x18] sm:$0xff] (!%p367_p2) }
   0xb   : > { %894 = vmatprep.subr.bf16.mxu0 (!%p367_p2), %v1010_v4  ;;  %v904_v26 = vpack.c.bf16 (!%p367_p2), %v523_v24, %v522_v23  ;;  %v907_v28 = vpack.c.bf16 (!%p367_p2), %v525_v27, %v524_v25  ;;  %v526_v29 = vld [vmem:[%s1259_s5 + $0x20] sm:$0xff] (!%p367_p2)  ;;  %v527_v30 = vld [vmem:[%s1259_s5 + $0x28] sm:$0xff] (!%p367_p2)  ;;  %v528_v38 = vld [vmem:[%s1259_s5 + $0x30] sm:$0xff] (!%p367_p2) }
   0xc   : > { %v910_v31 = vpack.c.bf16 (!%p367_p2), %v527_v30, %v526_v29  ;;  %v433_v32 = vld [vmem:[%s1255_s1] sm:$0x1] (!%p367_p2)  ;;  %v529_v39 = vld [vmem:[%s1259_s5 + $0x38] sm:$0xff] (!%p367_p2)  ;;  %v606_v42 = vld [vmem:[%s1261_s7 + $0x8] sm:$0xff] (!%p367_p2)  ;;  %v1014_v30 = vmov (!%p367_p2), 0  }
   0xd   : > { %905 = vmatpush3.bf16.msra.mxu1 (!%p367_p2), %v904_v26  ;;  %v435_v33 = vld [vmem:[%s1256_s2] sm:$0x1] (!%p367_p2)  ;;  %v913_v40 = vpack.c.bf16 (!%p367_p2), %v529_v39, %v528_v38  ;;  %v607_v43 = vld [vmem:[%s1261_s7 + $0x10] sm:$0xff] (!%p367_p2)  ;;  %v608_v45 = vld [vmem:[%s1261_s7 + $0x18] sm:$0xff] (!%p367_p2)  ;;  %v1013_v26 = vmov (!%p367_p2), 2139095040  }
   0xe   : > { %896 = vmatpush3.bf16.msra.mxu0 (!%p367_p2), %v895_v7  ;;  %906 = vmatprep.subr.bf16.mxu1 (!%p367_p2), %v1010_v4  ;;  %v605_v41 = vld [vmem:[%s1261_s7] sm:$0xff] (!%p367_p2)  ;;  %v919_v46 = vpack.c.bf16 (!%p367_p2), %v608_v45, %v607_v43  ;;  %v610_v48 = vld [vmem:[%s1261_s7 + $0x28] sm:$0xff] (!%p367_p2)  ;;  %v611_v55 = vld [vmem:[%s1261_s7 + $0x30] sm:$0xff] (!%p367_p2) }
   0xf   : > { %s1272_s24 = smov (!%p410_p3, %s793_s24), 1  ;;  %897 = vmatprep.subr.bf16.mxu0 %v1010_v4  ;;  %v916_v44 = vpack.c.bf16 %v606_v42, %v605_v41  ;;  %v609_v47 = vld [vmem:[%s1261_s7 + $0x20] sm:$0xff]  ;;  %v612_v56 = vld [vmem:[%s1261_s7 + $0x38] sm:$0xff] }
  0x10   : > { %s1105_s14 = sshll.u32 %s1272_s24, 1  ;;  %v922_v49 = vpack.c.bf16 %v610_v48, %v609_v47  ;;  %v446_v50 = vld [vmem:[%s1258_s4] sm:$0x1]  ;;  %v925_v57 = vpack.c.bf16 %v612_v56, %v611_v55 }
  0x11   : > { %s413_s21 = scalar_lea.vmem %s1254_s0, %s1105_s14  ;;  %908 = vmatpush3.bf16.msra.mxu1 %v907_v28  ;;  %v530_v58 = vld [vmem:[%s1260_s6] sm:$0x1]  ;;  %s417_s26 = scalar_lea.vmem %s1265_s11, %s1105_s14 }
  0x12   : > { %v1118_v10 = vld [vmem:[%s413_s21] sm:$0x3]  ;;  %899 = vmatpush3.bf16.msra.mxu0 %v898_v12  ;;  %909 = vmatprep.subr.bf16.mxu1 %v1010_v4  ;;  %s421_s21 = scalar_lea.vmem %s1266_s12, %s1105_s14 }
  0x13   : > { %v424_v11 = vsel %vm423_vm0, %v1118_v10, -inf  ;;  %900 = vmatprep.subr.bf16.mxu0 %v1010_v4  ;;  %v613_v63 = vld [vmem:[%s1262_s8] sm:$0x1]  ;;  %vm950_vm7 = vcmp.eq.f32.partialorder %v1118_v10, 0  ;;  %vm949_vm11 = vcmp.lt.f32.partialorder %v1118_v10, 0 }
  0x14   : > { %v425_v13 = vrot.slane %v424_v11, 4  ;;  %v688_v3 = vld [vmem:[%s1263_s9] sm:$0x1] }
  0x15   : > { %911 = vmatpush3.bf16.msra.mxu1 %v910_v31  ;;  %v694_v7 = vld [vmem:[#allocation2] sm:$0x1] }
  0x16   : > { %v426_v14 = vmax.f32 %v424_v11, %v425_v13  ;;  %902 = vmatpush3.bf16.msra.mxu0 %v901_v21  ;;  %912 = vmatprep.subr.bf16.mxu1 %v1010_v4 }
  0x17   : > { %915 = vmatprep.subr.bf16.mxu0 %v1010_v4 }
  0x18   : > { %v427_v15 = vrot.slane %v426_v14, 2 }
  0x19   : > { %914 = vmatpush3.bf16.msra.mxu1 %v913_v40 }
  0x1a   : > { %v428_v16 = vmax.f32 %v426_v14, %v427_v15  ;;  %v929_v15 = vand.u32 2147483647, %v1118_v10 }
  0x1c   : > { %v429_v17 = vrot.slane %v428_v16, 1  ;;  %vm953_vm8 = vcmp.gt.f32.partialorder %v929_v15, 1065353216 }
  0x1e   : > { %v430_v18 = vmax.f32 %v428_v16, %v429_v17 }
  0x20   : > { %431 = vmax.xlane.f32.xlu0 %v430_v18 }
  0xad   : > { %v432_v34 = vpop.xlane.xlu0 %431 }
  0xae   : > { %v434_v35 = vmul.f32 %v433_v32, %v432_v34 }
  0xb0   : > { %v436_v36 = vadd.f32 %v435_v33, %v434_v35 }
  0xb2   : > { %v437_v37 = vmax.f32 %v436_v36, 0.0 }
  0xb4   : > { %851 = vmatmul.mubr.msk.f32.vlgmr.msra.gmra.mrb[0].mxu0 %vm447_vm2, %v437_v37 }
  0xb5   : > { %888 = vmatprep.mubr.msk.f32.mxu0 %vm1011_vm1, %v1012_v22  ;;  %917 = vmatpush3.bf16.msra.mxu0 %v916_v44 }
  0xb6   : > { %918 = vmatprep.subr.bf16.mxu0 %v1010_v4 }
  0xb9   : > { %920 = vmatpush3.bf16.msra.mxu0 %v919_v46 }
  0xba   : > { %921 = vmatprep.subr.bf16.mxu0 %v1010_v4 }
  0xbd   : > { %923 = vmatpush3.bf16.msra.mxu0 %v922_v49 }
  0xbe   : > { %924 = vmatprep.subr.bf16.mxu0 %v1010_v4 }
  0xc1   : > { %926 = vmatpush3.bf16.msra.mxu0 %v925_v57 }
 0x187   : > { %v517_v51 = vpop.f32.mrb[0].mxu0 }
 0x188   : > { %v518_v52 = vadd.f32 %v517_v51, %v446_v50  ;;  %v852_v53 = vpop.f32.mrb[1].mxu0 }
 0x18a   : > { %v521_v54 = vmax.f32 %v518_v52, 0.0 }
 0x18c   : > { %870 = vmatmul.mubr.msk.f32.vlgmr.msra.gmra.mrb[0].mxu1 %vm447_vm2, %v521_v54 }
 0x25f   : > { %v600_v59 = vpop.f32.mrb[0].mxu1 }
 0x260   : > { %v601_v60 = vadd.f32 %v600_v59, %v530_v58  ;;  %v871_v61 = vpop.f32.mrb[1].mxu1 }
 0x262   : > { %v604_v62 = vmax.f32 %v601_v60, 0.0 }
 0x264   : > { %889 = vmatmul.mubr.msk.f32.vlgmr.msra.gmra.mrb[2].mxu0 %vm447_vm2, %v604_v62 }
 0x337   : > { %v683_v0 = vpop.f32.mrb[2].mxu0 }
 0x338   : > { %v684_v1 = vadd.f32 %v683_v0, %v613_v63  ;;  %v890_v2 = vpop.f32.mrb[3].mxu0 }
 0x33a   : > { %v687_v4 = vmax.f32 %v684_v1, 0.0 }
 0x33c   : > { %v689_v5 = vmul.f32 %v688_v3, %v687_v4 }
 0x33e   : > { %v691_v6 = vsel %vm690_vm3, %v689_v5, 0.0 }
 0x33f   : > { %692 = vadd.xlane.f32.xlu0 %v691_v6 }
 0x3cc   : > { %v693_v8 = vpop.xlane.xlu0 %692 }
 0x3cd   : > { %v695_v9 = vadd.f32 %v694_v7, %v693_v8 }
 0x3cf   : > { %v804_v11 = vmul.f32 -1.442695, %v695_v9 }
 0x3d1   : > { %994 = vpow2.f32 %v804_v11 }
 0x3db   : > { %v995_v12 = vpop.eup %994 }
 0x3dc   : > { %v699_v13 = vadd.f32 1.0, %v995_v12 }
 0x3de   : > { %996 = vrcp.f32 %v699_v13 }
 0x3df   : > { %998 = vlog2.f32 %v929_v15 }
 0x3e8   : > { %v997_v14 = vpop.eup %996 }
 0x3e9   : > { %927 = vpush %v997_v14  ;;  %v999_v16 = vpop.eup %998 }
 0x41a   : > { %s928_s22 = spop %927 }
 0x41b   : > { %v704_v17 = vstv %s928_s22 }
 0x41c   : > { %v931_v18 = vmul.f32 %v999_v16, %v704_v17  ;;  %v933_v19 = vand.u32 2147483647, %v704_v17  ;;  %708 = vst [vmem:[%s421_s21] sm:$0x3] %v704_v17  ;;  %v938_v20 = vtrunc.f32 %v704_v17  ;;  %vm937_vm5 = vcmp.lt.f32.partialorder %v704_v17, 0 }
 0x41d   : > { %vm1218_vm10 = vmand %vm937_vm5, %vm950_vm7  ;;  %v969_v27 = vsel %vm937_vm5, 0, %v1013_v26  ;;  %v957_v31 = vsel %vm937_vm5, 2139095040, %v1014_v30 }
 0x41e   : > { %1000 = vpow2.f32 %v931_v18  ;;  %vm934_vm4 = vcmp.eq.f32.partialorder %v933_v19, 2139095040  ;;  %v942_v21 = vtrunc.f32 %v933_v19  ;;  %vm939_vm6 = vcmp.ne.f32.partialorder %v704_v17, %v938_v20  ;;  %vm1224_vm12 = vmxor %vm937_vm5, %vm953_vm8 }
 0x41f   : > { %vm940_vm9 = vmor %vm939_vm6, %vm934_vm4  ;;  %vm941_vm1 = vcmp.lt.f32.partialorder %v933_v19, 1266679808  ;;  %vm952_vm6 = vcmp.lt.s32.totalorder %v1118_v10, 0  ;;  %v970_v32 = vxor.u32 2147483648, %v969_v27  ;;  %vm966_vm8 = vcmp.eq.f32.partialorder %v1118_v10, 3212836864 }
 0x420   : > { %v943_v22 = vcvt.f32.s32 %v942_v21  ;;  %vm946_vm14 = vmneg %vm940_vm9 }
 0x421   : > { %vm955_vm0 = vmand %vm949_vm11, %vm940_vm9  ;;  %vm954_vm9 = vcmp.eq.f32.partialorder %v929_v15, 2139095040 }
 0x422   : > { %v944_v23 = vand.u32 1, %v943_v22  ;;  %vm964_vm2 = vmor %vm1218_vm10, %vm1224_vm12  ;;  %vm974_vm12 = vcmp.ne.f32.partialorder %v1118_v10, %v1118_v10 }
 0x423   : > { %v965_v34 = vsel %vm964_vm2, 2139095040, %v1014_v30 }
 0x424   : > { %vm945_vm13 = vcmp.eq.s32.totalorder %v944_v23, 1  ;;  %v967_v38 = vsel %vm966_vm8, 1065353216, %v965_v34 }
 0x425   : > { %vm947_vm15 = vmand %vm945_vm13, %vm946_vm14  ;;  %vm975_vm13 = vcmp.ne.f32.partialorder %v704_v17, %v704_v17  ;;  %vm935_vm14 = vcmp.eq.f32.partialorder %v704_v17, 0 }
 0x426   : > { %vm948_vm3 = vmand %vm941_vm1, %vm947_vm15  ;;  %vm951_vm15 = vcmp.eq.f32.partialorder %v1118_v10, 1065353216 }
 0x427   : > { %v971_v36 = vsel %vm948_vm3, %v970_v32, %v969_v27  ;;  %vm959_vm10 = vmand %vm952_vm6, %vm948_vm3 }
 0x428   : > { %v1001_v28 = vpop.eup %1000  ;;  %v972_v40 = vsel %vm949_vm11, %v971_v36, %v969_v27  ;;  %vm976_vm5 = vmor %vm974_vm12, %vm975_vm13 }
 0x429   : > { %v956_v29 = vsel %vm955_vm0, 2143289344, %v1001_v28  ;;  %vm936_vm0 = vcmp.eq.f32.partialorder %v704_v17, 1065353216 }
 0x42a   : > { %v958_v33 = vsel %vm950_vm7, %v957_v31, %v956_v29  ;;  %vm978_vm7 = vmor %vm951_vm15, %vm935_vm14 }
 0x42b   : > { %v960_v35 = vxor.u32 2147483648, %v958_v33 }
 0x42d   : > { %v961_v37 = vsel %vm959_vm10, %v960_v35, %v958_v33 }
 0x42e   : > { %v968_v39 = vsel %vm934_vm4, %v967_v38, %v961_v37 }
 0x42f   : > { %v973_v41 = vsel %vm954_vm9, %v972_v40, %v968_v39 }
 0x430   : > { %v977_v42 = vsel %vm976_vm5, 2143289344, %v973_v41 }
 0x431   : > { %v979_v43 = vsel %vm978_vm7, 1065353216, %v977_v42 }
 0x432   : > { %v980_v44 = vsel %vm936_vm0, %v1118_v10, %v979_v43 }
 0x433   : > { %707 = vst [vmem:[%s417_s26] sm:$0x3] %v980_v44 }
 0x434 PF: > { %s25_s23 = sadd.s32 1, %s1008_s23  }
 0x435   : > { %p22_p4 = scmp.ge.s32.totalorder %s25_s23, 4  }
 0x437   :  { %24 = sbr.rel (!%p22_p4) target bundleno = 3 (0x3), region = 106 }

</bundles_post_ra>
